<compile_context>
chip_gen: v7x
topology: tpu7x:2x2x1
jax: 0.10.0
libtpu: 0.0.40
codegen_flags: <defaults>
</compile_context>

<pallas_src>
import functools

import jax
import jax.numpy as jnp
from jax.experimental import pallas as pl
from jax.experimental.pallas import tpu as pltpu


def _channel_attention_kernel(x_ref, w1_ref, b1_ref, w2_ref, b2_ref, o_ref,
                              *, hw_valid):
    # x_ref: (Bt, C, HWp)  w1: (C, Cr)  b1: (1, Cr)  w2: (Cr, C)  b2: (1, C)
    x = x_ref[...]                                   # native dtype, no upcast
    bt, c, hwp = x.shape

    # Mask padded spatial lanes out of the max (static branch: only traced
    # when the wrapper actually padded HW).
    if hw_valid != hwp:
        lane = jax.lax.broadcasted_iota(jnp.int32, (bt, c, hwp), 2)
        x_for_max = jnp.where(lane < hw_valid, x, jnp.full_like(x, -jnp.inf))
    else:
        x_for_max = x

    # Spatial reductions; only the reduced (Bt, C) stats go to f32.
    avg = jnp.sum(x, axis=-1).astype(jnp.float32) * (1.0 / hw_valid)   # (Bt, C)
    mx = jnp.max(x_for_max, axis=-1).astype(jnp.float32)               # (Bt, C)

    # Fused shared MLP: one fc1 matmul over both stats; fc2 is linear so it is
    # applied once to leaky(h_avg) + leaky(h_max)  (=> + 2*b2).
    stats = jnp.concatenate([avg, mx], axis=0)                         # (2Bt, C)
    h = jnp.dot(stats, w1_ref[...],
                preferred_element_type=jnp.float32) + b1_ref[...]      # (2Bt, Cr)
    h = jnp.where(h >= 0, h, 0.01 * h)                                 # leaky_relu
    g = h[:bt] + h[bt:]                                                # (Bt, Cr)
    y = jnp.dot(g, w2_ref[...],
                preferred_element_type=jnp.float32) + 2.0 * b2_ref[...]  # (Bt, C)
    att = jax.nn.sigmoid(y)                                            # (Bt, C)

    # Cast the gate down before the big elementwise pass; broadcast over HW.
    gate = att.astype(x.dtype)[:, :, None]                             # (Bt, C, 1)
    o_ref[...] = (x * gate).astype(o_ref.dtype)


def _choose_block_batch(b, per_batch_bytes, target_block_bytes):
    """Largest divisor of b whose block fits the target, keeping >=2 grid
    steps when b allows it (v7x has two TensorCores)."""
    divisors = [d for d in range(1, b + 1) if b % d == 0]
    max_bt = max(1, target_block_bytes // max(per_batch_bytes, 1))
    bt = max([d for d in divisors if d <= max_bt] or [1])
    if b // bt < 2 and b >= 2:
        bt = max(d for d in divisors if d <= b // 2)
    return bt


def channel_attention(x_nchw, w1, b1, w2, b2, *, target_block_bytes=4 << 20):
    """x_nchw: (B, C, H, W). Weights follow PyTorch nn.Linear convention:
       w1: (C//r, C), b1: (C//r,), w2: (C, C//r), b2: (C,)."""
    B, C, H, W = x_nchw.shape
    HW = H * W
    Cr = w1.shape[0]
    itemsize = jnp.dtype(x_nchw.dtype).itemsize

    # Lane-dense spatial axis: pad HW up to a multiple of 128 (min 128).
    HWp = max(128, ((HW + 127) // 128) * 128)
    x = x_nchw.reshape(B, C, HW)
    if HWp != HW:
        x = jnp.pad(x, ((0, 0), (0, 0), (0, HWp - HW)))

    # Batch tile: pack several batch elements per grid step.
    per_batch_bytes = C * HWp * itemsize
    bt = _choose_block_batch(B, per_batch_bytes, target_block_bytes)
    block_bytes = bt * per_batch_bytes

    # Weights transposed once in the wrapper for row-oriented matmuls.
    w1_t = w1.T                                   # (C, Cr)
    w2_t = w2.T                                   # (Cr, C)
    b1_2d = b1.reshape(1, Cr)
    b2_2d = b2.reshape(1, C)
    w_bytes = (C * Cr + Cr + Cr * C + C) * 4

    # VMEM budget: double-buffered input + output blocks + weights + margin.
    # TODO(synk): if 4*block_bytes approaches ~48 MiB (very large C*HW), switch
    # to a two-phase reduce-then-apply pipeline that tiles HW instead of using
    # full-spatial blocks (needed to stay inside v7x's 64 MiB VMEM).
    vmem_need = 4 * block_bytes + 4 * w_bytes + (1 << 20)
    vmem_limit = int(min(max(vmem_need, 32 << 20), 48 << 20))

    cost = pl.CostEstimate(
        flops=5 * B * C * HW + 6 * B * C * Cr,
        transcendentals=B * C,
        bytes_accessed=2 * B * C * HWp * itemsize + w_bytes,
    )

    out = pl.pallas_call(
        functools.partial(_channel_attention_kernel, hw_valid=HW),
        out_shape=jax.ShapeDtypeStruct((B, C, HWp), x.dtype),
        grid_spec=pltpu.PrefetchScalarGridSpec(
            num_scalar_prefetch=0,
            grid=(B // bt,),
            in_specs=[
                pl.BlockSpec((bt, C, HWp), lambda i: (i, 0, 0)),
                pl.BlockSpec((C, Cr), lambda i: (0, 0)),
                pl.BlockSpec((1, Cr), lambda i: (0, 0)),
                pl.BlockSpec((Cr, C), lambda i: (0, 0)),
                pl.BlockSpec((1, C), lambda i: (0, 0)),
            ],
            out_specs=pl.BlockSpec((bt, C, HWp), lambda i: (i, 0, 0)),
        ),
        compiler_params=pltpu.CompilerParams(
            dimension_semantics=("parallel",),
            vmem_limit_bytes=vmem_limit,
        ),
        cost_estimate=cost,
    )(x, w1_t, b1_2d, w2_t, b2_2d)

    if HWp != HW:
        out = out[:, :, :HW]
    return out.reshape(B, C, H, W)


def reference_channel_attention(x, w1, b1, w2, b2):
    """Pure-JAX reference mirroring the PyTorch forward."""
    avg = jnp.mean(x, axis=(2, 3))                # (B, C)
    mx = jnp.max(x, axis=(2, 3))                  # (B, C)

    def mlp(v):
        h = v @ w1.T + b1
        h = jnp.where(h >= 0, h, 0.01 * h)
        return h @ w2.T + b2

    att = jax.nn.sigmoid(mlp(avg) + mlp(mx))      # (B, C)
    return x * att[:, :, None, None]


if __name__ == "__main__":
    # Small shapes consistent with the module: channels divisible by
    # reduction_ratio (default 16).
    B, C, H, W = 2, 32, 16, 16
    reduction_ratio = 16
    Cr = C // reduction_ratio

    key = jax.random.PRNGKey(0)
    kx, k1, k2, k3, k4 = jax.random.split(key, 5)

    x = jax.random.normal(kx, (B, C, H, W), dtype=jnp.float32)
    # Deterministic synthetic parameters (PyTorch nn.Linear weight shapes).
    w1 = jax.random.normal(k1, (Cr, C), dtype=jnp.float32) * 0.1
    b1 = jax.random.normal(k2, (Cr,), dtype=jnp.float32) * 0.1
    w2 = jax.random.normal(k3, (C, Cr), dtype=jnp.float32) * 0.1
    b2 = jax.random.normal(k4, (C,), dtype=jnp.float32) * 0.1

    out = jax.block_until_ready(channel_attention(x, w1, b1, w2, b2))
    ref = reference_channel_attention(x, w1, b1, w2, b2)

    assert out.shape == (B, C, H, W)
    assert jnp.allclose(out, ref, atol=1e-5, rtol=1e-5), "mismatch vs reference"

    print("KERNEL_OK")
</pallas_src>

<mosaic_0001>
module attributes {stable_mosaic.version = 11 : i64} {
  func.func @_channel_attention_kernel(%arg0: i32, %arg1: memref<1x32x256xf32, #tpu.memory_space<vmem>>, %arg2: memref<32x2xf32, #tpu.memory_space<vmem>>, %arg3: memref<1x2xf32, #tpu.memory_space<vmem>>, %arg4: memref<2x32xf32, #tpu.memory_space<vmem>>, %arg5: memref<1x32xf32, #tpu.memory_space<vmem>>, %arg6: memref<1x32x256xf32, #tpu.memory_space<vmem>>) attributes {dimension_semantics = [#tpu.dimension_semantics<parallel>], iteration_bounds = array<i64: 2>, scalar_prefetch = 0 : i64, scratch_operands = 0 : i64, tpu.core_type = #tpu.core_type<tc>, window_params = [{transform_indices = @transform_0, window_bounds = array<i64: 1, 32, 256>}, {pipeline_mode = #tpu.pipeline_mode<synchronous>, transform_indices = @transform_1, window_bounds = array<i64: 32, 2>}, {pipeline_mode = #tpu.pipeline_mode<synchronous>, transform_indices = @transform_2, window_bounds = array<i64: 1, 2>}, {pipeline_mode = #tpu.pipeline_mode<synchronous>, transform_indices = @transform_3, window_bounds = array<i64: 2, 32>}, {pipeline_mode = #tpu.pipeline_mode<synchronous>, transform_indices = @transform_4, window_bounds = array<i64: 1, 32>}, {transform_indices = @transform_5, window_bounds = array<i64: 1, 32, 256>}]} {
    %c0 = arith.constant 0 : index
    %c0_0 = arith.constant 0 : index
    %c0_1 = arith.constant 0 : index
    %0 = vector.load %arg1[%c0, %c0_0, %c0_1] : memref<1x32x256xf32, #tpu.memory_space<vmem>>, vector<1x32x256xf32>
    %cst = arith.constant dense<0.000000e+00> : vector<1x32xf32>
    %1 = vector.multi_reduction <add>, %0, %cst [2] : vector<1x32x256xf32> to vector<1x32xf32>
    %cst_2 = arith.constant 3.906250e-03 : f32
    %2 = vector.broadcast %cst_2 : f32 to vector<1x32xf32>
    %3 = arith.mulf %1, %2 : vector<1x32xf32>
    %cst_3 = arith.constant dense<0xFF800000> : vector<1x32xf32>
    %4 = vector.multi_reduction <maximumf>, %0, %cst_3 [2] : vector<1x32x256xf32> to vector<1x32xf32>
    %5 = tpu.concatenate %3, %4 in 0 : vector<1x32xf32>, vector<1x32xf32> -> vector<2x32xf32>
    %c0_4 = arith.constant 0 : index
    %c0_5 = arith.constant 0 : index
    %6 = vector.load %arg2[%c0_4, %c0_5] : memref<32x2xf32, #tpu.memory_space<vmem>>, vector<32x2xf32>
    %cst_6 = arith.constant dense<0.000000e+00> : vector<2x2xf32>
    %7 = tpu.matmul %5, %6, %cst_6 {dimension_numbers = #tpu.dot_dimension_numbers<[1], [0], [0], [1], [0, 0, 1, 1], [], []>} : vector<2x32xf32>, vector<32x2xf32>, vector<2x2xf32> -> vector<2x2xf32>
    %c0_7 = arith.constant 0 : index
    %c0_8 = arith.constant 0 : index
    %8 = vector.load %arg3[%c0_7, %c0_8] : memref<1x2xf32, #tpu.memory_space<vmem>>, vector<1x2xf32>
    %9 = vector.broadcast %8 : vector<1x2xf32> to vector<2x2xf32>
    %10 = arith.addf %7, %9 : vector<2x2xf32>
    %cst_9 = arith.constant 0.000000e+00 : f32
    %11 = vector.broadcast %cst_9 : f32 to vector<2x2xf32>
    %12 = arith.cmpf oge, %10, %11 : vector<2x2xf32>
    %cst_10 = arith.constant 0.00999999977 : f32
    %13 = vector.broadcast %cst_10 : f32 to vector<2x2xf32>
    %14 = arith.mulf %13, %10 : vector<2x2xf32>
    %15 = arith.select %12, %10, %14 : vector<2x2xi1>, vector<2x2xf32>
    %16 = vector.extract_strided_slice %15 {offsets = [0, 0], sizes = [1, 2], strides = [1, 1]} : vector<2x2xf32> to vector<1x2xf32>
    %17 = vector.extract_strided_slice %15 {offsets = [1, 0], sizes = [1, 2], strides = [1, 1]} : vector<2x2xf32> to vector<1x2xf32>
    %18 = arith.addf %16, %17 : vector<1x2xf32>
    %c0_11 = arith.constant 0 : index
    %c0_12 = arith.constant 0 : index
    %19 = vector.load %arg4[%c0_11, %c0_12] : memref<2x32xf32, #tpu.memory_space<vmem>>, vector<2x32xf32>
    %cst_13 = arith.constant dense<0.000000e+00> : vector<1x32xf32>
    %20 = tpu.matmul %18, %19, %cst_13 {dimension_numbers = #tpu.dot_dimension_numbers<[1], [0], [0], [1], [0, 0, 1, 1], [], []>} : vector<1x2xf32>, vector<2x32xf32>, vector<1x32xf32> -> vector<1x32xf32>
    %c0_14 = arith.constant 0 : index
    %c0_15 = arith.constant 0 : index
    %21 = vector.load %arg5[%c0_14, %c0_15] : memref<1x32xf32, #tpu.memory_space<vmem>>, vector<1x32xf32>
    %cst_16 = arith.constant 2.000000e+00 : f32
    %22 = vector.broadcast %cst_16 : f32 to vector<1x32xf32>
    %23 = arith.mulf %22, %21 : vector<1x32xf32>
    %24 = arith.addf %20, %23 : vector<1x32xf32>
    %25 = arith.negf %24 : vector<1x32xf32>
    %26 = math.exp %25 : vector<1x32xf32>
    %cst_17 = arith.constant 1.000000e+00 : f32
    %27 = vector.broadcast %cst_17 : f32 to vector<1x32xf32>
    %28 = arith.addf %27, %26 : vector<1x32xf32>
    %29 = arith.divf %27, %28 : vector<1x32xf32>
    %30 = vector.shape_cast %29 : vector<1x32xf32> to vector<1x32x1xf32>
    %31 = vector.broadcast %30 : vector<1x32x1xf32> to vector<1x32x256xf32>
    %32 = arith.mulf %0, %31 : vector<1x32x256xf32>
    %c0_18 = arith.constant 0 : index
    %c0_19 = arith.constant 0 : index
    %c0_20 = arith.constant 0 : index
    %33 = vector.load %arg6[%c0_18, %c0_19, %c0_20] : memref<1x32x256xf32, #tpu.memory_space<vmem>>, vector<1x32x256xf32>
    tpu.vector_store %arg6[%c0_18, %c0_19, %c0_20], %32 {strides = array<i32>} : memref<1x32x256xf32, #tpu.memory_space<vmem>>, vector<1x32x256xf32>,
    return
  }
  func.func @transform_0(%arg0: i32) -> (i32, i32, i32) {
    %c0_i32 = arith.constant 0 : i32
    %c0_i32_0 = arith.constant 0 : i32
    %c0_i32_1 = arith.constant 0 : i32
    return %arg0, %c0_i32, %c0_i32_0 : i32, i32, i32
  }
  func.func @transform_1(%arg0: i32) -> (i32, i32) {
    %c0_i32 = arith.constant 0 : i32
    %c0_i32_0 = arith.constant 0 : i32
    %c0_i32_1 = arith.constant 0 : i32
    return %c0_i32, %c0_i32_0 : i32, i32
  }
  func.func @transform_2(%arg0: i32) -> (i32, i32) {
    %c0_i32 = arith.constant 0 : i32
    %c0_i32_0 = arith.constant 0 : i32
    %c0_i32_1 = arith.constant 0 : i32
    return %c0_i32, %c0_i32_0 : i32, i32
  }
  func.func @transform_3(%arg0: i32) -> (i32, i32) {
    %c0_i32 = arith.constant 0 : i32
    %c0_i32_0 = arith.constant 0 : i32
    %c0_i32_1 = arith.constant 0 : i32
    return %c0_i32, %c0_i32_0 : i32, i32
  }
  func.func @transform_4(%arg0: i32) -> (i32, i32) {
    %c0_i32 = arith.constant 0 : i32
    %c0_i32_0 = arith.constant 0 : i32
    %c0_i32_1 = arith.constant 0 : i32
    return %c0_i32, %c0_i32_0 : i32, i32
  }
  func.func @transform_5(%arg0: i32) -> (i32, i32, i32) {
    %c0_i32 = arith.constant 0 : i32
    %c0_i32_0 = arith.constant 0 : i32
    %c0_i32_1 = arith.constant 0 : i32
    return %arg0, %c0_i32, %c0_i32_0 : i32, i32, i32
  }
}

</mosaic_0001>

<bundles_post_ra>
// kernel: tpu_custom_call.1
= control target key start
LH: loop header
LB: loop body
LE: loop exit
PB: predicated region body
PF: predicated region fallthrough
CT: control target
= control target key end

     0   :  { %10 = vsyncpa [#allocation3], 0  ;;  %s1118_s0 = inlined_call_operand.hbm [shape: f32[2,32,256], index: 0, kind: input, shape index: {}]   ;;  %s1119_s1 = inlined_call_operand.vmem [shape: f32[32,2], index: 1, kind: input, shape index: {}]   ;;  %s1120_s2 = inlined_call_operand.vmem [shape: f32[1,2], index: 2, kind: input, shape index: {}]   ;;  %s1121_s3 = inlined_call_operand.vmem [shape: f32[2,32], index: 3, kind: input, shape index: {}]   ;;  %s1122_s4 = inlined_call_operand.vmem [shape: f32[1,32], index: 4, kind: input, shape index: {}]   ;;  %s1123_s5 = inlined_call_operand.hbm [shape: f32[2,32,256], index: 5, kind: output, shape index: {}]  }
   0x1   :  { %12 = vsyncpa [#allocation3 + $0x1], 0 }
   0x2   :  { %13 = vsyncpa [#allocation4], 0 }
   0x3   :  { %15 = vsyncpa [#allocation4 + $0x1], 0  ;;  %s882_s18 = smov 0   ;;  %s884_s19 = smov 0  }
   0x4   :  { %s886_s20 = smov 0   ;;  %s888_s21 = smov 0  }
   0x5 LB: > { %s903_s22 = sadd.s32 4294967295, %s841_s21   ;;  %s638_s23 = sadd.s32 4294967294, %s841_s21   ;;  %s841_s21 = sphi %s888_s21, %s1136_s21   ;;  %s837_s20 = sphi %s886_s20, %s1135_s20   ;;  %s833_s19 = sphi %s884_s19, %s1134_s19   ;;  %s829_s18 = sphi %s882_s18, %s1133_s18  }
   0x6   : > { %s907_s24 = sadd.s32 1, %s841_s21   ;;  %s28_s25 = sadd.s32 1, %s837_s20 }
   0x7   : > { %s25_s26 = ssub.s32 %s841_s21, %s907_s24  ;;  %p35_p0 = scmp.ne.s32.totalorder %s837_s20, %s833_s19 }
   0x8   : > { %p26_p1 = scmp.eq.s32.totalorder %s25_s26, 0  ;;  %p36_p2 = scmp.eq.s32.totalorder %s841_s21, 0 }
   0x9   : > { %p41_p3 = scmp.ne.s32.totalorder %s833_s19, %s829_s18  ;;  %p42_p4 = scmp.eq.s32.totalorder %s903_s22, 0 }
   0xa   : > { %s919_s27 = scalar_select %p26_p1, %s837_s20, %s28_s25  }
   0xb   : > { %p921_p5 = por %p36_p2, %p35_p0  ;;  %p925_p6 = por %p42_p4, %p41_p3 }
   0xc   : > { %p149_p7 = scmp.eq.s32.totalorder %s903_s22, 1  ;;  %p155_p8 = scmp.eq.s32.totalorder %s638_s23, 1 }
   0xd   : > { %p700_p10 = scmp.lt.s32.totalorder %s841_s21, 2  ;;  %s187_s7 = sand.u32 1, %s837_s20  }
   0xe   : > { %p932_p11 = por %p149_p7, %p35_p0  ;;  %p936_p12 = por %p155_p8, %p41_p3 }
   0xf   : > { %s657_s8 = sshll.u32 %s841_s21, 10  ;;  %s641_s9 = sshll.u32 %s187_s7, 6 }
  0x10   : > { %s1127_s30 = scalar_select %p932_p11, 1, 0 }
  0x11   : > { %s1128_s6 = scalar_select %p936_p12, 1, 0 }
  0x12   : > { %s945_s12 = scalar_lea.hbm %s1118_s0, %s657_s8  ;;  %s191_s13 = scalar_lea.vmem [#allocation2], %s641_s9 }
  0x13   : > { %s198_s14 = sshll.u32 %s191_s13, 4  ;;  %p949_p13 = pnand %p700_p10, %p921_p5  ;;  %s953_s14 = int_to_ptr.vmem [resolvable:$true] %s198_s14 }
  0x14   : > { %s955_s16 = scalar_lea.sflag [#allocation3], %s187_s7  ;;  %s745_s17 = scalar_lea.hbm %s945_s12, 1024 }
  0x15   : > { %p746_p0 = scmp.ne.s32.totalorder %s945_s12, %s745_s17  ;;  %p747_p1 = pneg %p949_p13 }
  0x16   : > { %s750_s26 = scalar_lea.hbm %s1118_s0, 2048  ;;  %p751_p4 = scmp.lt.u32.totalorder %s945_s12, %s1118_s0 }
  0x17   : > { %p748_p2 = pnand %p747_p1, %p746_p0  ;;  %p752_p5 = scmp.lt.u32.totalorder %s750_s26, %s745_s17 }
  0x18   : > { %p754_p8 = scmp.lt.u32.totalorder %s745_s17, %s945_s12 }
  0x19   : > { %p749_p3 = pneg %p748_p2  ;;  %p753_p7 = por %p752_p5, %p751_p4 }
  0x1b   : > { %p755_p10 = por %p754_p8, %p753_p7 }
  0x1d   : > { %p756_p9 = pnand %p755_p10, %p749_p3 }
  0x1f   : > { %759 = shalt.err (!%p756_p9)
}
  0x20   : > { %s760_s7 = scalar_lea.vmem %s953_s14, 1024  ;;  %s843_s9 = smov [#allocation2]  }
  0x21   : > { %p761_p0 = scmp.ne.s32.totalorder %s953_s14, %s760_s7  ;;  %s765_s10 = sshll.u32 %s843_s9, 4  ;;  %s766_s10 = int_to_ptr.vmem [resolvable:$false] %s765_s10 }
  0x22   : > { %s767_s11 = scalar_lea.vmem %s766_s10, 2048  ;;  %p768_p11 = scmp.lt.s32.totalorder %s953_s14, %s766_s10 }
  0x23   : > { %p763_p2 = pnand %p761_p0, %p747_p1  ;;  %p769_p4 = scmp.lt.s32.totalorder %s767_s11, %s760_s7 }
  0x25   : > { %p764_p12 = pneg %p763_p2  ;;  %p770_p5 = por %p769_p4, %p768_p11 }
  0x27   : > { %p771_p7 = pnand %p770_p5, %p764_p12 }
  0x29   : > { %774 = shalt.err (!%p771_p7)
}
  0x2a   : > { %s844_s13 = smov 256   ;;  %s845_s17 = smov 16  }
  0x2b   : > { %695 = dma.hbm_to_vmem [thread:$0]  (!%p949_p13), %s945_s12, 1024, %s953_s14, %s955_s16, %s844_s13, %s844_s13, %s845_s17  }
  0x2c   : > { %p644_p9 = scmp.ge.s32.totalorder %s841_s21, 1  ;;  %p206_p1 = scmp.lt.s32.totalorder %s841_s21, 3 }
  0x2e   : > { %p207_p3 = pnand %p644_p9, %p206_p1 }
  0x2f   : > { %s986_s23 = sand.u32 (!%p207_p3), 1, %s833_s19  }
  0x30   : > { %210 = sbr.rel (%p207_p3) target bundleno = 822 (0x336), region = 40  ;;  %s645_s25 = sshll.u32 (!%p207_p3), %s986_s23, 6 }
  0x31   : > { %s213_s26 = scalar_lea.sflag (!%p207_p3), [#allocation3], %s986_s23  ;;  %s216_s28 = scalar_lea.vmem (!%p207_p3), [#allocation2], %s645_s25 }
  0x37   : > { %820 = dma.done.wait (%p925_p6), %s213_s26, 1024  }
  0x38   : > { %822 = vsyncadd (%p925_p6), %s213_s26, 4294966272  ;;  %v996_v0 = vld [vmem:[%s216_s28 + $0x20] sm:$0xff]  ;;  %v998_v1 = vld [vmem:[%s216_s28 + $0x28] sm:$0xff]  ;;  %v846_v19 = vmov 0.0|0.0   ;;  %vm847_vm0 = vmmov 0   ;;  %v848_v23 = vmov 0.0   ;;  %v283_v24 = vlaneseq }
  0x39   : > { %v1000_v2 = vld [vmem:[%s216_s28] sm:$0xff]  ;;  %v257_v3 = vadd.f32 %v998_v1, %v996_v0  ;;  %v1004_v4 = vld [vmem:[%s216_s28 + $0x8] sm:$0xff]  ;;  %v1006_v5 = vld [vmem:[%s216_s28 + $0x30] sm:$0xff]  ;;  %v273_v15 = vmax.f32 %v996_v0, %v998_v1  ;;  %682 = vmatprep.subr.bf16.mxu0 %v846_v19  ;;  %674 = vmatprep.mubr.msk.f32.mxu0 %vm847_vm0, %v848_v23  ;;  %vm294_vm1 = vcmask 130112   ;;  %vm301_vm2 = vcmask 195712   ;;  %s242_s29 = scalar_lea.vmem [#allocation5], %s645_s25 }
  0x3a   : > { %v1008_v6 = vld [vmem:[%s216_s28 + $0x38] sm:$0xff]  ;;  %v251_v7 = vadd.f32 %v1004_v4, %v1000_v2  ;;  %v1012_v8 = vld [vmem:[%s216_s28 + $0x10] sm:$0xff]  ;;  %v267_v13 = vmax.f32 %v1000_v2, %v1004_v4  ;;  %v337_v16 = vld [vmem:[%s1119_s1] sm:$0xff]  ;;  %677 = vmatprep.subr.mxu1 %v848_v23  ;;  %679 = vmatprep.mubr.msk.f32.mxu1 %vm847_vm0, %v848_v23  ;;  %v284_v25 = vand.u32 127, %v283_v24  ;;  %v1040_v28 = vshrl.u32 %v283_v24, 7  ;;  %s565_s12 = sshll.u32 %s242_s29, 4  ;;  %s1067_s12 = int_to_ptr.vmem [resolvable:$true] %s565_s12 }
  0x3b   : > { %v1014_v9 = vld [vmem:[%s216_s28 + $0x18] sm:$0xff]  ;;  %258 = vadd.xlane.f32.xlu1 %v257_v3  ;;  %v260_v10 = vadd.f32 %v1008_v6, %v1006_v5  ;;  %v276_v14 = vmax.f32 %v1006_v5, %v1008_v6  ;;  %v338_v17 = vld [vmem:[%s1119_s1 + $0x8] sm:$0xff]  ;;  %v339_v20 = vld [vmem:[%s1119_s1 + $0x10] sm:$0xff]  ;;  %vm308_vm3 = vcmask 261312   ;;  %vm335_vm4 = vcmask 1040384   ;;  %s658_s14 = sshll.u32 %s903_s22, 10 }
  0x3c   : > { %252 = vadd.xlane.f32.xlu0 %v251_v7  ;;  %v254_v11 = vadd.f32 %v1014_v9, %v1012_v8  ;;  %v270_v12 = vmax.f32 %v1012_v8, %v1014_v9  ;;  %v683_v18 = vpack.c.bf16 %v338_v17, %v337_v16  ;;  %v340_v21 = vld [vmem:[%s1119_s1 + $0x18] sm:$0xff]  ;;  %v289_v27 = vadd.s32 4294967288, %v284_v25  ;;  %v429_v61 = vld [vmem:[%s1121_s3] sm:$0x3]  ;;  %s1072_s16 = scalar_lea.hbm %s1123_s5, %s658_s14  ;;  %s552_s22 = scalar_lea.sflag [#allocation4], %s986_s23 }
  0x3d   : > { %v686_v22 = vpack.c.bf16 %v340_v21, %v339_v20  ;;  %v296_v30 = vadd.s32 4294967280, %v284_v25  ;;  %v287_v33 = vsub.s32 %v284_v25, %v1040_v28  ;;  %v303_v35 = vadd.s32 4294967272, %v284_v25  ;;  %v647_v62 = vld [vmem:[%s1120_s2] ss:$0 sm:$0xff]  ;;  %s775_s8 = scalar_lea.vmem %s1067_s12, 1024  ;;  %p1130_p11 = scmp.ne.s32.totalorder %s1127_s30, 0 }
  0x3e   : > { %684 = vmatpush3.bf16.msra.mxu0 %v683_v18  ;;  %v292_v32 = vsub.s32 %v289_v27, %v1040_v28  ;;  %vm348_vm5 = vcmask 261120   ;;  %vm436_vm6 = vcmask 1041408   ;;  %vm432_vm8 = vcmask 15360   ;;  %p776_p6 = scmp.ne.s32.totalorder %s1067_s12, %s775_s8  ;;  %s849_s7 = smov [#allocation5]  }
  0x3f   : > { %261 = vadd.xlane.f32.xlu1 %v260_v10  ;;  %685 = vmatprep.subr.bf16.mxu0 %v846_v19  ;;  %v299_v38 = vsub.s32 %v296_v30, %v1040_v28  ;;  %v306_v43 = vsub.s32 %v303_v35, %v1040_v28  ;;  %s779_s9 = sshll.u32 %s849_s7, 4  ;;  %s780_s9 = int_to_ptr.vmem [resolvable:$false] %s779_s9 }
  0x40   : > { %255 = vadd.xlane.f32.xlu0 %v254_v11  ;;  %678 = vmatpush3.msk.msra.mxu1 %vm436_vm6, %v429_v61  ;;  %p777_p12 = pnand %p776_p6, %p1130_p11  ;;  %s781_s10 = scalar_lea.vmem %s780_s9, 2048 }
  0x41   : > { %p782_p8 = scmp.lt.s32.totalorder %s1067_s12, %s780_s9  ;;  %p783_p10 = scmp.lt.s32.totalorder %s781_s10, %s775_s8 }
  0x42   : > { %687 = vmatpush3.bf16.msra.mxu0 %v686_v22  ;;  %v518_v22 = vsub.s32 0, %v1040_v28  ;;  %p778_p13 = pneg %p777_p12 }
  0x43   : > { %271 = vmax.xlane.f32.xlu1 %v270_v12  ;;  %p784_p0 = por %p783_p10, %p782_p8 }
  0x44   : > { %268 = vmax.xlane.f32.xlu0 %v267_v13 }
  0x45   : > { %p785_p2 = pnand %p784_p0, %p778_p13 }
  0x47   : > { %277 = vmax.xlane.f32.xlu1 %v276_v14  ;;  %v430_v14 = vld [vmem:[%s1122_s4] sm:$0x1] }
  0x48   : > { %274 = vmax.xlane.f32.xlu0 %v273_v15  ;;  %v431_v15 = vmul.f32 2.0, %v430_v14 }
  0xc8   : > { %v259_v26 = vpop.xlane.xlu1 %258 }
  0xc9   : > { %v253_v29 = vpop.xlane.xlu0 %252  ;;  %v265_v39 = vmul.f32 0.00390625, %v259_v26 }
  0xca   : > { %v263_v34 = vmul.f32 0.00390625, %v253_v29 }
  0xcb   : > { %v300_v49 = vrot.slane %v265_v39, %v299_v38 }
  0xcc   : > { %v262_v31 = vpop.xlane.xlu1 %261  ;;  %v288_v42 = vrot.slane %v263_v34, %v287_v33 }
  0xcd   : > { %v256_v36 = vpop.xlane.xlu0 %255  ;;  %v266_v44 = vmul.f32 0.00390625, %v262_v31 }
  0xce   : > { %v264_v37 = vmul.f32 0.00390625, %v256_v36 }
  0xcf   : > { %v307_v51 = vrot.slane %v266_v44, %v306_v43 }
  0xd0   : > { %v293_v40 = vrot.slane %v264_v37, %v292_v32  ;;  %v272_v41 = vpop.xlane.xlu1 %271 }
  0xd1   : > { %v269_v45 = vpop.xlane.xlu0 %268  ;;  %v322_v47 = vrot.slane %v272_v41, %v292_v32 }
  0xd2   : > { %v295_v46 = vsel %vm294_vm1, %v293_v40, %v288_v42  ;;  %v318_v48 = vrot.slane %v269_v45, %v287_v33 }
  0xd3   : > { %v302_v55 = vsel %vm301_vm2, %v300_v49, %v295_v46 }
  0xd4   : > { %v278_v50 = vpop.xlane.xlu1 %277  ;;  %v323_v56 = vsel %vm294_vm1, %v322_v47, %v318_v48  ;;  %v309_v59 = vsel %vm308_vm3, %v307_v51, %v302_v55 }
  0xd5   : > { %v275_v52 = vpop.xlane.xlu0 %274  ;;  %v332_v53 = vrot.slane %v278_v50, %v306_v43 }
  0xd6   : > { %v327_v54 = vrot.slane %v275_v52, %v299_v38 }
  0xd8   : > { %v328_v57 = vsel %vm301_vm2, %v327_v54, %v323_v56 }
  0xd9   : > { %v333_v58 = vsel %vm308_vm3, %v332_v53, %v328_v57 }
  0xda   : > { %v336_v60 = vsel %vm335_vm4, %v309_v59, %v333_v58 }
  0xdb   : > { %675 = vmatmul.mubr.msk.f32.vlgmr.msra.gmra.mrb[0].mxu0 %vm348_vm5, %v336_v60 }
 0x1ae   : > { %v418_v63 = vpop.f32.mrb[0].mxu0 }
 0x1af   : > { %v419_v3 = vadd.f32 %v647_v62, %v418_v63  ;;  %v676_v7 = vpop.f32.mrb[1].mxu0 }
 0x1b1   : > { %vm422_vm7 = vcmp.ge.f32.partialorder %v419_v3, 0.0  ;;  %v423_v10 = vmul.f32 0.01, %v419_v3 }
 0x1b3   : > { %v424_v11 = vsel %vm422_vm7, %v419_v3, %v423_v10 }
 0x1b4   : > { %v426_v12 = vrot.slane %v424_v11, 1 }
 0x1b6   : > { %v428_v13 = vadd.f32 %v426_v12, %v424_v11 }
 0x1b8   : > { %680 = vmatmul.mubr.msk.f32.vlgmr.msra.gmra.mrb[0].mxu1 %vm432_vm8, %v428_v13 }
 0x28b   : > { %v506_v16 = vpop.f32.mrb[0].mxu1 }
 0x28c   : > { %v507_v17 = vadd.f32 %v506_v16, %v431_v15  ;;  %v681_v18 = vpop.f32.mrb[1].mxu1 }
 0x28e   : > { %v651_v19 = vmul.f32 -1.442695, %v507_v17 }
 0x290   : > { %741 = vpow2.f32 %v651_v19 }
 0x29a   : > { %v742_v20 = vpop.eup %741 }
 0x29b   : > { %v513_v21 = vadd.f32 1.0, %v742_v20 }
 0x29d   : > { %743 = vrcp.f32 %v513_v21 }
 0x2a7   : > { %v744_v23 = vpop.eup %743 }
 0x2a8   : > { %v519_v24 = vrot.slane %v744_v23, %v518_v22 }
 0x2aa   : > { %525 = vbcast.lane.b32.xlu1 %v519_v24, 264  ;;  %521 = vbcast.lane.b32.xlu0 %v519_v24, 256 }
 0x2ae   : > { %529 = vbcast.lane.b32.xlu1 %v519_v24, 272 }
 0x2b2   : > { %533 = vbcast.lane.b32.xlu1 %v519_v24, 280 }
 0x31c   : > { %v526_v25 = vpop.permute.xlu1 %525  ;;  %v522_v26 = vpop.permute.xlu0 %521 }
 0x31d   : > { %v537_v27 = vmul.f32 %v526_v25, %v1012_v8  ;;  %v538_v29 = vmul.f32 %v526_v25, %v1014_v9  ;;  %v535_v30 = vmul.f32 %v522_v26, %v1000_v2  ;;  %v536_v31 = vmul.f32 %v522_v26, %v1004_v4 }
 0x31f   : > { %545 = vst [vmem:[%s242_s29 + $0x10] sm:$0xff] %v537_v27  ;;  %546 = vst [vmem:[%s242_s29 + $0x18] sm:$0xff] %v538_v29 }
 0x320   : > { %543 = vst [vmem:[%s242_s29] sm:$0xff] %v535_v30  ;;  %544 = vst [vmem:[%s242_s29 + $0x8] sm:$0xff] %v536_v31  ;;  %v530_v28 = vpop.permute.xlu1 %529 }
 0x321   : > { %v539_v32 = vmul.f32 %v530_v28, %v996_v0  ;;  %v540_v8 = vmul.f32 %v530_v28, %v998_v1 }
 0x323   : > { %547 = vst [vmem:[%s242_s29 + $0x20] sm:$0xff] %v539_v32  ;;  %548 = vst [vmem:[%s242_s29 + $0x28] sm:$0xff] %v540_v8 }
 0x324   : > { %v534_v2 = vpop.permute.xlu1 %533 }
 0x325   : > { %v541_v4 = vmul.f32 %v534_v2, %v1006_v5  ;;  %v542_v0 = vmul.f32 %v534_v2, %v1008_v6 }
 0x327   : > { %549 = vst [vmem:[%s242_s29 + $0x30] sm:$0xff] %v541_v4  ;;  %550 = vst [vmem:[%s242_s29 + $0x38] sm:$0xff] %v542_v0 }
 0x328   : > { %788 = shalt.err (!%p785_p2)
}
 0x329   : > { %s789_s11 = scalar_lea.hbm %s1072_s16, 1024  ;;  %s793_s26 = scalar_lea.hbm %s1123_s5, 2048 }
 0x32a   : > { %p790_p4 = scmp.ne.s32.totalorder %s1072_s16, %s789_s11  ;;  %p794_p9 = scmp.lt.u32.totalorder %s1072_s16, %s1123_s5 }
 0x32b   : > { %p795_p1 = scmp.lt.u32.totalorder %s793_s26, %s789_s11  ;;  %p797_p6 = scmp.lt.u32.totalorder %s789_s11, %s1072_s16 }
 0x32c   : > { %p791_p5 = pnand %p790_p4, %p1130_p11 }
 0x32d   : > { %p796_p3 = por %p795_p1, %p794_p9 }
 0x32e   : > { %p792_p7 = pneg %p791_p5 }
 0x32f   : > { %p798_p12 = por %p797_p6, %p796_p3 }
 0x331   : > { %p799_p13 = pnand %p798_p12, %p792_p7 }
 0x333   : > { %802 = shalt.err (!%p799_p13)
}
 0x334   : > { %s850_s14 = smov 256   ;;  %s851_s25 = smov 16  }
 0x335   : > { %690 = dma.vmem_to_hbm [thread:$0]  (%p1130_p11), %s1067_s12, 1024, %s1072_s16, %s552_s22, %s850_s14, %s850_s14, %s851_s25  }
 0x336 PF: > { %s580_s15 = sand.u32 1, %s829_s18   ;;  %p1131_p8 = scmp.ne.s32.totalorder %s1128_s6, 0 }
 0x337   : > { %p1132_p10 = scmp.ge.s32.totalorder %s841_s21, 2  ;;  %s581_s8 = scalar_lea.sflag [#allocation4], %s580_s15 }
 0x339   : > { %p697_p0 = pnand %p1132_p10, %p1131_p8 }
 0x33b   : > { %824 = dma.done.wait (!%p697_p0), %s581_s8, 1024  }
 0x33c   : > { %826 = vsyncadd (!%p697_p0), %s581_s8, 4294966272  ;;  %p18_p2 = scmp.ge.s32.totalorder %s907_s24, 4   ;;  %s1133_s18 = smov %s833_s19 }
 0x33d   : > { %s1134_s19 = smov %s837_s20  ;;  %s1135_s20 = smov %s919_s27 }
 0x33e   : > { %s1136_s21 = smov %s907_s24  ;;  %20 = sbr.rel (!%p18_p2) target bundleno = 5 (0x5), region = 85 }
 0x345   :  { %586 = vsyncpa [#allocation3], 1 }
 0x346   :  { %588 = vsyncpa [#allocation3 + $0x1], 1 }
 0x347   :  { %589 = vsyncpa [#allocation4], 1 }
 0x348   :  { %591 = vsyncpa [#allocation4 + $0x1], 1 }

</bundles_post_ra>
